<compile_context>
chip_gen: v7x
topology: tpu7x:2x2x1
jax: 0.10.0
libtpu: 0.0.40
codegen_flags: <defaults>
</compile_context>

<pallas_src>
import math

import jax
import jax.numpy as jnp
import numpy as np
from jax.experimental import pallas as pl
from jax.experimental.pallas import tpu as pltpu


def _make_styled_conv_kernel(K, use_bf16_matmul):
    NEG_SLOPE = 0.2
    ACT_SCALE = math.sqrt(2.0)

    def kernel(style_ref, modw_ref, modb_ref, w2_ref, wT_ref, xcol_ref,
               noise_ref, nw_ref, actb_ref, out_ref):
        # --- style modulation (EqualLinear), column-oriented ------------------
        # (C_IN, S) @ (S, 1) + (C_IN, 1) -> s: (C_IN, 1)
        s = jnp.dot(modw_ref[...], style_ref[0],
                    preferred_element_type=jnp.float32) + modb_ref[...]

        # --- demodulation without materializing the modulated weight ----------
        # demod[o] = rsqrt( sum_i s[i]^2 * scale^2 * sum_{kh,kw} w[o,i,kh,kw]^2 + eps )
        demod = jax.lax.rsqrt(
            jnp.dot(w2_ref[...], s * s,
                    preferred_element_type=jnp.float32) + 1e-8)          # (C_OUT, 1)

        # --- fold style into the im2col activations ---------------------------
        # im2col rows are ordered (kh, kw, c_in); s repeats along the K*K groups.
        s_rows = jnp.concatenate([s] * (K * K), axis=0)                  # (K*K*C_IN, 1)
        xm = xcol_ref[0] * s_rows                                        # (K*K*C_IN, tHW)

        # --- single MXU matmul: (C_OUT, KKC) @ (KKC, tHW) ----------------------
        w = wT_ref[...]
        if use_bf16_matmul:
            w = w.astype(jnp.bfloat16)
            xm = xm.astype(jnp.bfloat16)
        acc = jnp.dot(w, xm, preferred_element_type=jnp.float32)         # (C_OUT, tHW)

        # fold demodulation into output rows
        acc = acc * demod

        # --- noise injection: scalar weight from SMEM, row-broadcast noise ----
        acc = acc + nw_ref[0] * noise_ref[0]                             # (1, tHW) bcast

        # --- fused leaky relu (bias + leaky_relu(0.2) * sqrt(2)), f32 epilogue -
        y = acc + actb_ref[...]                                          # (C_OUT, 1) bcast
        y = jnp.where(y >= 0.0, y, NEG_SLOPE * y) * ACT_SCALE
        out_ref[...] = y[None].astype(out_ref.dtype)

    return kernel


def styled_conv_forward(x_nchw, style, noise_nchw, params, *,
                        tile_hw=None, use_bf16_matmul=False, vmem_limit_bytes=None):
    """StyledConv forward. x: (B,C_in,H,W), style: (B,style_dim), noise: (B,1,H,W)."""
    B, C_IN, H, W = x_nchw.shape
    S = style.shape[1]
    conv_w = params["conv_weight"]                 # (C_OUT, C_IN, K, K)
    C_OUT, _, K, _ = conv_w.shape
    pad = K // 2
    HW = H * W
    KKC = K * K * C_IN
    conv_scale = 1.0 / math.sqrt(C_IN * K * K)     # ModulatedConv2d.scale
    mod_scale = 1.0 / math.sqrt(S)                 # EqualLinear.scale (lr_mul = 1)

    # --- glue: parameter / layout prep (plain JAX) --------------------------------
    conv_w = conv_w.astype(jnp.float32)
    # weight transposed so C_OUT rides sublanes and (kh, kw, c_in) rides lanes
    wT = (conv_w * conv_scale).transpose(0, 2, 3, 1).reshape(C_OUT, KKC)      # (C_OUT, KKC)
    # precomputed squared-weight sums for in-kernel demodulation
    w2T = (conv_scale ** 2) * jnp.sum(conv_w ** 2, axis=(2, 3))               # (C_OUT, C_IN)
    modw = (params["mod_weight"].astype(jnp.float32) * mod_scale)             # (C_IN, S)
    modb = params["mod_bias"].reshape(C_IN, 1).astype(jnp.float32)            # lr_mul = 1
    actb = params["act_bias"].reshape(C_OUT, 1).astype(jnp.float32)
    nw = params["noise_weight"].reshape(1).astype(jnp.float32)                # SMEM scalar
    style_col = style.astype(jnp.float32).reshape(B, S, 1)

    # im2col slab (B, K*K*C_IN, H*W); row order (kh, kw, c_in) matches wT's flattening
    xpad = jnp.pad(x_nchw.astype(jnp.float32),
                   ((0, 0), (0, 0), (pad, pad), (pad, pad)))
    cols = []
    for kh in range(K):
        for kw in range(K):
            cols.append(xpad[:, :, kh:kh + H, kw:kw + W].reshape(B, C_IN, HW))
    x_col = jnp.concatenate(cols, axis=1)                                      # (B, KKC, HW)
    noise_col = noise_nchw.astype(jnp.float32).reshape(B, 1, HW)

    # --- spatial tiling of the lane (H*W) axis -------------------------------------
    if tile_hw is None:
        tile_hw = min(HW, 2048)
    tile_hw = min(tile_hw, HW)
    if HW % tile_hw != 0 or (tile_hw % 128 != 0 and tile_hw != HW):
        tile_hw = HW
    n_t = HW // tile_hw

    kernel = _make_styled_conv_kernel(K, use_bf16_matmul)
    cp_kwargs = dict(dimension_semantics=("parallel", "parallel"))
    if vmem_limit_bytes is not None:
        cp_kwargs["vmem_limit_bytes"] = vmem_limit_bytes

    out = pl.pallas_call(
        kernel,
        out_shape=jax.ShapeDtypeStruct((B, C_OUT, HW), jnp.float32),
        grid_spec=pltpu.PrefetchScalarGridSpec(
            num_scalar_prefetch=0,
            grid=(B, n_t),
            in_specs=[
                pl.BlockSpec((1, S, 1), lambda b, t: (b, 0, 0)),               # style (col)
                pl.BlockSpec((C_IN, S), lambda b, t: (0, 0)),                  # mod weight
                pl.BlockSpec((C_IN, 1), lambda b, t: (0, 0)),                  # mod bias
                pl.BlockSpec((C_OUT, C_IN), lambda b, t: (0, 0)),              # W2 (demod)
                pl.BlockSpec((C_OUT, KKC), lambda b, t: (0, 0)),               # conv weight^T
                pl.BlockSpec((1, KKC, tile_hw), lambda b, t: (b, 0, t)),       # im2col slab
                pl.BlockSpec((1, 1, tile_hw), lambda b, t: (b, 0, t)),         # noise row
                pl.BlockSpec(memory_space=pltpu.MemorySpace.SMEM),             # noise weight
                pl.BlockSpec((C_OUT, 1), lambda b, t: (0, 0)),                 # act bias
            ],
            out_specs=pl.BlockSpec((1, C_OUT, tile_hw), lambda b, t: (b, 0, t)),
        ),
        compiler_params=pltpu.CompilerParams(**cp_kwargs),
    )(style_col, modw, modb, w2T, wT, x_col, noise_col, nw, actb)

    return out.reshape(B, C_OUT, H, W)     # already NCHW — no transpose needed


def styled_conv_reference(x, style, noise, params):
    """Pure-JAX reference mirroring the PyTorch forward (NCHW)."""
    B, C_IN, H, W = x.shape
    conv_w = params["conv_weight"]
    C_OUT, _, K, _ = conv_w.shape
    S = style.shape[1]
    conv_scale = 1.0 / math.sqrt(C_IN * K * K)
    mod_scale = 1.0 / math.sqrt(S)
    pad = K // 2

    s = style @ (params["mod_weight"] * mod_scale).T + params["mod_bias"]   # (B, C_IN)
    w = conv_scale * conv_w[None] * s[:, None, :, None, None]               # (B,O,I,K,K)
    demod = jax.lax.rsqrt(jnp.sum(w ** 2, axis=(2, 3, 4)) + 1e-8)
    w = w * demod[:, :, None, None, None]

    def conv_one(xi, wi):
        return jax.lax.conv_general_dilated(
            xi[None], wi, window_strides=(1, 1),
            padding=[(pad, pad), (pad, pad)],
            dimension_numbers=("NCHW", "OIHW", "NCHW"))[0]

    out = jax.vmap(conv_one)(x, w)                                          # (B,O,H,W)
    out = out + params["noise_weight"].reshape(()) * noise
    out = out + params["act_bias"].reshape(1, C_OUT, 1, 1)
    out = jnp.where(out >= 0, out, 0.2 * out) * math.sqrt(2.0)
    return out


if __name__ == "__main__":
    key = jax.random.PRNGKey(0)
    B, C_IN, C_OUT, K, S, H, W = 2, 4, 8, 3, 32, 16, 16
    ks = jax.random.split(key, 6)

    x = jax.random.normal(ks[0], (B, C_IN, H, W), jnp.float32)
    style = jax.random.normal(ks[1], (B, S), jnp.float32)
    # noise passed explicitly (PyTorch would sample it if None) to stay deterministic
    noise = jax.random.normal(ks[2], (B, 1, H, W), jnp.float32)

    params = {
        "conv_weight": jax.random.normal(ks[3], (C_OUT, C_IN, K, K), jnp.float32),
        "mod_weight": jax.random.normal(ks[4], (C_IN, S), jnp.float32),
        "mod_bias": jnp.ones((C_IN,), jnp.float32),                 # bias_init = 1
        # NoiseInjection.weight / FusedLeakyReLU.bias init to zeros in PyTorch;
        # use small deterministic nonzero values so these code paths are exercised.
        "noise_weight": jnp.asarray([0.25], jnp.float32),
        "act_bias": 0.1 * jax.random.normal(ks[5], (C_OUT,), jnp.float32),
    }

    ref = styled_conv_reference(x, style, noise, params)

    # f32 MXU path, spatial tiling exercised (HW = 256, two 128-lane tiles / sample)
    out = styled_conv_forward(x, style, noise, params, tile_hw=128)
    out = jax.block_until_ready(out)
    np.testing.assert_allclose(np.asarray(out), np.asarray(ref), rtol=2e-5, atol=2e-5)

    # bf16 MXU operand path (native rate on v5e/v6e/v7x), full-HW tile; looser tolerance
    out_bf16 = styled_conv_forward(x, style, noise, params, use_bf16_matmul=True)
    out_bf16 = jax.block_until_ready(out_bf16)
    np.testing.assert_allclose(np.asarray(out_bf16), np.asarray(ref), rtol=5e-2, atol=5e-2)

    print("KERNEL_OK")
</pallas_src>

<mosaic_0001>
module attributes {stable_mosaic.version = 11 : i64} {
  func.func @kernel(%arg0: i32, %arg1: i32, %arg2: memref<1x32x1xf32, #tpu.memory_space<vmem>>, %arg3: memref<4x32xf32, #tpu.memory_space<vmem>>, %arg4: memref<4x1xf32, #tpu.memory_space<vmem>>, %arg5: memref<8x4xf32, #tpu.memory_space<vmem>>, %arg6: memref<8x36xf32, #tpu.memory_space<vmem>>, %arg7: memref<1x36x128xf32, #tpu.memory_space<vmem>>, %arg8: memref<1x1x128xf32, #tpu.memory_space<vmem>>, %arg9: memref<1xf32, #tpu.memory_space<smem>>, %arg10: memref<8x1xf32, #tpu.memory_space<vmem>>, %arg11: memref<1x8x128xf32, #tpu.memory_space<vmem>>) attributes {dimension_semantics = [#tpu.dimension_semantics<parallel>, #tpu.dimension_semantics<parallel>], iteration_bounds = array<i64: 2, 2>, scalar_prefetch = 0 : i64, scratch_operands = 0 : i64, tpu.core_type = #tpu.core_type<tc>, window_params = [{transform_indices = @transform_0, window_bounds = array<i64: 1, 32, 1>}, {pipeline_mode = #tpu.pipeline_mode<synchronous>, transform_indices = @transform_1, window_bounds = array<i64: 4, 32>}, {pipeline_mode = #tpu.pipeline_mode<synchronous>, transform_indices = @transform_2, window_bounds = array<i64: 4, 1>}, {pipeline_mode = #tpu.pipeline_mode<synchronous>, transform_indices = @transform_3, window_bounds = array<i64: 8, 4>}, {pipeline_mode = #tpu.pipeline_mode<synchronous>, transform_indices = @transform_4, window_bounds = array<i64: 8, 36>}, {transform_indices = @transform_5, window_bounds = array<i64: 1, 36, 128>}, {transform_indices = @transform_6, window_bounds = array<i64: 1, 1, 128>}, {transform_indices = @transform_7, window_bounds = array<i64: 1>}, {pipeline_mode = #tpu.pipeline_mode<synchronous>, transform_indices = @transform_8, window_bounds = array<i64: 8, 1>}, {transform_indices = @transform_9, window_bounds = array<i64: 1, 8, 128>}]} {
    %c0 = arith.constant 0 : index
    %c0_0 = arith.constant 0 : index
    %0 = vector.load %arg3[%c0, %c0_0] : memref<4x32xf32, #tpu.memory_space<vmem>>, vector<4x32xf32>
    %c0_1 = arith.constant 0 : index
    %c0_2 = arith.constant 0 : index
    %c0_3 = arith.constant 0 : index
    %1 = vector.load %arg2[%c0_1, %c0_2, %c0_3] : memref<1x32x1xf32, #tpu.memory_space<vmem>>, vector<1x32x1xf32>
    %2 = vector.shape_cast %1 : vector<1x32x1xf32> to vector<32x1xf32>
    %cst = arith.constant dense<0.000000e+00> : vector<4x1xf32>
    %3 = tpu.matmul %0, %2, %cst {dimension_numbers = #tpu.dot_dimension_numbers<[1], [0], [0], [1], [0, 0, 1, 1], [], []>} : vector<4x32xf32>, vector<32x1xf32>, vector<4x1xf32> -> vector<4x1xf32>
    %c0_4 = arith.constant 0 : index
    %c0_5 = arith.constant 0 : index
    %4 = vector.load %arg4[%c0_4, %c0_5] : memref<4x1xf32, #tpu.memory_space<vmem>>, vector<4x1xf32>
    %5 = arith.addf %3, %4 : vector<4x1xf32>
    %c0_6 = arith.constant 0 : index
    %c0_7 = arith.constant 0 : index
    %6 = vector.load %arg5[%c0_6, %c0_7] : memref<8x4xf32, #tpu.memory_space<vmem>>, vector<8x4xf32>
    %7 = arith.mulf %5, %5 : vector<4x1xf32>
    %cst_8 = arith.constant dense<0.000000e+00> : vector<8x1xf32>
    %8 = tpu.matmul %6, %7, %cst_8 {dimension_numbers = #tpu.dot_dimension_numbers<[1], [0], [0], [1], [0, 0, 1, 1], [], []>} : vector<8x4xf32>, vector<4x1xf32>, vector<8x1xf32> -> vector<8x1xf32>
    %cst_9 = arith.constant 9.99999993E-9 : f32
    %9 = vector.broadcast %cst_9 : f32 to vector<8x1xf32>
    %10 = arith.addf %8, %9 : vector<8x1xf32>
    %11 = math.rsqrt %10 : vector<8x1xf32>
    %12 = tpu.concatenate %5, %5, %5, %5, %5, %5, %5, %5, %5 in 0 : vector<4x1xf32>, vector<4x1xf32>, vector<4x1xf32>, vector<4x1xf32>, vector<4x1xf32>, vector<4x1xf32>, vector<4x1xf32>, vector<4x1xf32>, vector<4x1xf32> -> vector<36x1xf32>
    %c0_10 = arith.constant 0 : index
    %c0_11 = arith.constant 0 : index
    %c0_12 = arith.constant 0 : index
    %13 = vector.load %arg7[%c0_10, %c0_11, %c0_12] : memref<1x36x128xf32, #tpu.memory_space<vmem>>, vector<1x36x128xf32>
    %14 = vector.shape_cast %13 : vector<1x36x128xf32> to vector<36x128xf32>
    %15 = vector.broadcast %12 : vector<36x1xf32> to vector<36x128xf32>
    %16 = arith.mulf %14, %15 : vector<36x128xf32>
    %c0_13 = arith.constant 0 : index
    %c0_14 = arith.constant 0 : index
    %17 = vector.load %arg6[%c0_13, %c0_14] : memref<8x36xf32, #tpu.memory_space<vmem>>, vector<8x36xf32>
    %cst_15 = arith.constant dense<0.000000e+00> : vector<8x128xf32>
    %18 = tpu.matmul %17, %16, %cst_15 {dimension_numbers = #tpu.dot_dimension_numbers<[1], [0], [0], [1], [0, 0, 1, 1], [], []>} : vector<8x36xf32>, vector<36x128xf32>, vector<8x128xf32> -> vector<8x128xf32>
    %19 = vector.broadcast %11 : vector<8x1xf32> to vector<8x128xf32>
    %20 = arith.mulf %18, %19 : vector<8x128xf32>
    %c0_16 = arith.constant 0 : index
    %21 = memref.load %arg9[%c0_16] : memref<1xf32, #tpu.memory_space<smem>>
    %c0_17 = arith.constant 0 : index
    %c0_18 = arith.constant 0 : index
    %c0_19 = arith.constant 0 : index
    %22 = vector.load %arg8[%c0_17, %c0_18, %c0_19] : memref<1x1x128xf32, #tpu.memory_space<vmem>>, vector<1x1x128xf32>
    %23 = vector.shape_cast %22 : vector<1x1x128xf32> to vector<1x128xf32>
    %24 = vector.broadcast %21 : f32 to vector<1x128xf32>
    %25 = arith.mulf %24, %23 : vector<1x128xf32>
    %26 = vector.broadcast %25 : vector<1x128xf32> to vector<8x128xf32>
    %27 = arith.addf %20, %26 : vector<8x128xf32>
    %c0_20 = arith.constant 0 : index
    %c0_21 = arith.constant 0 : index
    %28 = vector.load %arg10[%c0_20, %c0_21] : memref<8x1xf32, #tpu.memory_space<vmem>>, vector<8x1xf32>
    %29 = vector.broadcast %28 : vector<8x1xf32> to vector<8x128xf32>
    %30 = arith.addf %27, %29 : vector<8x128xf32>
    %cst_22 = arith.constant 0.000000e+00 : f32
    %31 = vector.broadcast %cst_22 : f32 to vector<8x128xf32>
    %32 = arith.cmpf oge, %30, %31 : vector<8x128xf32>
    %cst_23 = arith.constant 2.000000e-01 : f32
    %33 = vector.broadcast %cst_23 : f32 to vector<8x128xf32>
    %34 = arith.mulf %33, %30 : vector<8x128xf32>
    %35 = arith.select %32, %30, %34 : vector<8x128xi1>, vector<8x128xf32>
    %cst_24 = arith.constant 1.41421354 : f32
    %36 = vector.broadcast %cst_24 : f32 to vector<8x128xf32>
    %37 = arith.mulf %35, %36 : vector<8x128xf32>
    %38 = vector.shape_cast %37 : vector<8x128xf32> to vector<1x8x128xf32>
    %c0_25 = arith.constant 0 : index
    %c0_26 = arith.constant 0 : index
    %c0_27 = arith.constant 0 : index
    %39 = vector.load %arg11[%c0_25, %c0_26, %c0_27] : memref<1x8x128xf32, #tpu.memory_space<vmem>>, vector<1x8x128xf32>
    tpu.vector_store %arg11[%c0_25, %c0_26, %c0_27], %38 {strides = array<i32>} : memref<1x8x128xf32, #tpu.memory_space<vmem>>, vector<1x8x128xf32>,
    return
  }
  func.func @transform_0(%arg0: i32, %arg1: i32) -> (i32, i32, i32) {
    %c0_i32 = arith.constant 0 : i32
    %c0_i32_0 = arith.constant 0 : i32
    %c0_i32_1 = arith.constant 0 : i32
    return %arg0, %c0_i32, %c0_i32_0 : i32, i32, i32
  }
  func.func @transform_1(%arg0: i32, %arg1: i32) -> (i32, i32) {
    %c0_i32 = arith.constant 0 : i32
    %c0_i32_0 = arith.constant 0 : i32
    %c0_i32_1 = arith.constant 0 : i32
    return %c0_i32, %c0_i32_0 : i32, i32
  }
  func.func @transform_2(%arg0: i32, %arg1: i32) -> (i32, i32) {
    %c0_i32 = arith.constant 0 : i32
    %c0_i32_0 = arith.constant 0 : i32
    %c0_i32_1 = arith.constant 0 : i32
    return %c0_i32, %c0_i32_0 : i32, i32
  }
  func.func @transform_3(%arg0: i32, %arg1: i32) -> (i32, i32) {
    %c0_i32 = arith.constant 0 : i32
    %c0_i32_0 = arith.constant 0 : i32
    %c0_i32_1 = arith.constant 0 : i32
    return %c0_i32, %c0_i32_0 : i32, i32
  }
  func.func @transform_4(%arg0: i32, %arg1: i32) -> (i32, i32) {
    %c0_i32 = arith.constant 0 : i32
    %c0_i32_0 = arith.constant 0 : i32
    %c0_i32_1 = arith.constant 0 : i32
    return %c0_i32, %c0_i32_0 : i32, i32
  }
  func.func @transform_5(%arg0: i32, %arg1: i32) -> (i32, i32, i32) {
    %c0_i32 = arith.constant 0 : i32
    %c0_i32_0 = arith.constant 0 : i32
    return %arg0, %c0_i32, %arg1 : i32, i32, i32
  }
  func.func @transform_6(%arg0: i32, %arg1: i32) -> (i32, i32, i32) {
    %c0_i32 = arith.constant 0 : i32
    %c0_i32_0 = arith.constant 0 : i32
    return %arg0, %c0_i32, %arg1 : i32, i32, i32
  }
  func.func @transform_7(%arg0: i32, %arg1: i32) -> i32 {
    %c0_i32 = arith.constant 0 : i32
    %c0_i32_0 = arith.constant 0 : i32
    return %c0_i32 : i32
  }
  func.func @transform_8(%arg0: i32, %arg1: i32) -> (i32, i32) {
    %c0_i32 = arith.constant 0 : i32
    %c0_i32_0 = arith.constant 0 : i32
    %c0_i32_1 = arith.constant 0 : i32
    return %c0_i32, %c0_i32_0 : i32, i32
  }
  func.func @transform_9(%arg0: i32, %arg1: i32) -> (i32, i32, i32) {
    %c0_i32 = arith.constant 0 : i32
    %c0_i32_0 = arith.constant 0 : i32
    return %arg0, %c0_i32, %arg1 : i32, i32, i32
  }
}

</mosaic_0001>

<bundles_post_ra>
// kernel: tpu_custom_call.1
= control target key start
LH: loop header
LB: loop body
LE: loop exit
PB: predicated region body
PF: predicated region fallthrough
CT: control target
= control target key end

     0   :  { %s1357_s0 = inlined_call_operand.vmem [shape: f32[2,32,1], index: 0, kind: input, shape index: {}]   ;;  %s1358_s1 = inlined_call_operand.vmem [shape: f32[4,32], index: 1, kind: input, shape index: {}]   ;;  %s1359_s2 = inlined_call_operand.vmem [shape: f32[4,1], index: 2, kind: input, shape index: {}]   ;;  %s1360_s3 = inlined_call_operand.vmem [shape: f32[8,4], index: 3, kind: input, shape index: {}]   ;;  %s1361_s4 = inlined_call_operand.vmem [shape: f32[8,36], index: 4, kind: input, shape index: {}]   ;;  %s1362_s5 = inlined_call_operand.vmem [shape: f32[2,36,256], index: 5, kind: input, shape index: {}]   ;;  %s1363_s6 = inlined_call_operand.vmem [shape: f32[2,1,256], index: 6, kind: input, shape index: {}]   ;;  %s1364_s7 = inlined_call_operand.<no memory space> [shape: f32[1], index: 7, kind: input, shape index: {}]   ;;  %s1365_s8 = inlined_call_operand.vmem [shape: f32[8,1], index: 8, kind: input, shape index: {}]   ;;  %s1366_s9 = inlined_call_operand.hbm [shape: f32[2,8,256], index: 9, kind: output, shape index: {}]  }
   0x1   :  { %14 = sst [smem:[#allocation2]] %s1364_s7 }
   0x2   :  { %15 = vsyncpa [#allocation5], 0 }
   0x3   :  { %17 = vsyncpa [#allocation5 + $0x1], 0  ;;  %s1173_s11 = smov 0   ;;  %s1175_s12 = smov 0  }
   0x4   :  { %s1177_s13 = smov 0   ;;  %s1179_s14 = smov 0  }
   0x5   :  { %s1181_s15 = smov 0   ;;  %s1183_s16 = smov 0  }
   0x6   :  { %s1185_s17 = smov 0   ;;  %s1187_s18 = smov 0  }
   0x7 LB: > { %s862_s7 = sadd.s32 4294967295, %s1113_s18   ;;  %s863_s19 = sadd.s32 4294967294, %s1113_s18   ;;  %s1113_s18 = sphi %s1187_s18, %s23_s18   ;;  %s1109_s17 = sphi %s1185_s17, %s1382_s17   ;;  %s1105_s16 = sphi %s1183_s16, %s1381_s16   ;;  %s1101_s15 = sphi %s1181_s15, %s1380_s15   ;;  %s1097_s14 = sphi %s1179_s14, %s1379_s14   ;;  %s1093_s13 = sphi %s1177_s13, %s1378_s13   ;;  %s1089_s12 = sphi %s1175_s12, %s1377_s12   ;;  %s1085_s11 = sphi %s1173_s11, %s1376_s11  }
   0x8   : > { %s32_s20 = sadd.s32 1, %s1105_s16  ;;  %s35_s21 = sadd.s32 1, %s1109_s17 }
   0x9   : > { %p33_p0 = scmp.ge.s32.totalorder %s32_s20, 2  ;;  %p161_p1 = scmp.ne.s32.totalorder %s1093_s13, %s1089_s12 }
   0xa   : > { %p162_p2 = scmp.eq.s32.totalorder %s1113_s18, 0  ;;  %p263_p5 = scmp.eq.s32.totalorder %s862_s7, 3 }
   0xb   : > { %s1384_s20 = smov (%p33_p0, %s32_s20), 0  ;;  %s1386_s21 = smov (!%p33_p0, %s35_s21), %s1109_s17 }
   0xc   : > { %1369 = sst [smem:[#allocation7_spill]] %s1384_s20  ;;  %s150_s22 = ssub.s32 %s1105_s16, %s1384_s20 }
   0xd   : > { %p1225_p3 = por %p162_p2, %p161_p1  ;;  %p37_p4 = scmp.ge.s32.totalorder %s1386_s21, 2 }
   0xe   : > { %p268_p6 = scmp.ne.s32.totalorder %s1089_s12, %s1085_s11  ;;  %p269_p7 = scmp.eq.s32.totalorder %s863_s19, 3 }
   0xf   : > { %s1388_s21 = smov (%p37_p4, %s1386_s21), 0  ;;  %p1233_p8 = por %p263_p5, %p161_p1 }
  0x10   : > { %1371 = sst [smem:[#allocation8_spill]] %s1388_s21  ;;  %p1237_p9 = por %p269_p7, %p268_p6 }
  0x11   : > { %s149_s26 = ssub.s32 %s1109_s17, %s1388_s21  ;;  %s154_s28 = sadd.s32 1, %s1093_s13 }
  0x12   : > { %s151_s27 = sor.u32 %s150_s22, %s149_s26  ;;  %p865_p11 = scmp.ge.s32.totalorder %s1113_s18, 4 }
  0x13   : > { %p152_p10 = scmp.eq.s32.totalorder %s151_s27, 0 }
  0x14   : > { %303 = sbr.rel (%p865_p11) target bundleno = 37 (0x25), region = 40 }
  0x15   : > { %s1245_s29 = scalar_select %p152_p10, %s1093_s13, %s154_s28  }
  0x1b   : > { %314 = sbr.rel (!%p1225_p3) target bundleno = 37 (0x25), region = 48  ;;  %s316_s30 = sand.u32 (%p1225_p3), 1, %s1093_s13  }
  0x1c   : > { %s938_s10 = smul.u32 (%p1225_p3), 10, %s1109_s17 }
  0x1d   : > { %s937_s7 = smul.u32 (%p1225_p3), 40, %s316_s30 }
  0x1e   : > { %s320_s19 = sadd.s32 (%p1225_p3), %s1105_s16, %s938_s10 }
  0x1f   : > { %s866_s20 = sshll.u32 (%p1225_p3), %s320_s19, 3  ;;  %s318_s27 = scalar_lea.vmem (%p1225_p3), [#allocation3], %s937_s7 }
  0x20   : > { %s322_s26 = scalar_lea.vmem (%p1225_p3), %s1362_s5, %s866_s20 }
  0x21   : > { %v358_v0 = vld [vmem:[%s322_s26] sm:$0xff] (%p1225_p3)  ;;  %v360_v1 = vld [vmem:[%s322_s26 + $0x10] sm:$0xff] (%p1225_p3) }
  0x22   : > { %v362_v2 = vld [vmem:[%s322_s26 + $0x20] sm:$0xff]  ;;  %359 = vst [vmem:[%s318_s27] sm:$0xff] %v358_v0  ;;  %361 = vst [vmem:[%s318_s27 + $0x8] sm:$0xff] %v360_v1  ;;  %v364_v3 = vld [vmem:[%s322_s26 + $0x30] sm:$0xff] }
  0x23   : > { %363 = vst [vmem:[%s318_s27 + $0x10] sm:$0xff] %v362_v2  ;;  %v366_v4 = vld [vmem:[%s322_s26 + $0x40] sm:$0xff]  ;;  %365 = vst [vmem:[%s318_s27 + $0x18] sm:$0xff] %v364_v3 }
  0x24   : > { %367 = vst [vmem:[%s318_s27 + $0x20] sm:$0xff] %v366_v4 }
  0x25 PF: > { %p867_p12 = scmp.ge.s32.totalorder %s1113_s18, 1  ;;  %p382_p13 = scmp.lt.s32.totalorder %s1113_s18, 5 }
  0x27   : > { %p383_p0 = pnand %p867_p12, %p382_p13 }
  0x28   : > { %p436_p1 = scmp.lt.s32.totalorder (!%p383_p0), %s1101_s15, 1  ;;  %v1115_v5 = vmov (!%p383_p0), 0.0|0.0   ;;  %vm1116_vm0 = vmmov (!%p383_p0), 0   ;;  %v1117_v6 = vmov (!%p383_p0), 0.0   ;;  %v448_v13 = vld [vmem:[%s1358_s1] sm:$0xf] (!%p383_p0)  ;;  %v721_v43 = vlaneseq (!%p383_p0) }
  0x29   : > { %386 = sbr.rel (%p383_p0) target bundleno = 657 (0x291), region = 90  ;;  %925 = vmatprep.subr.bf16.mxu0 (!%p383_p0), %v1115_v5  ;;  %904 = vmatprep.mubr.msk.f32.mxu0 (!%p383_p0), %vm1116_vm0, %v1117_v6  ;;  %vm454_vm1 = vcmask (!%p383_p0), 261120   ;;  %v1118_v14 = vmov (!%p383_p0), 0   ;;  %v453_v15 = vld [vmem:[%s1359_s2] sm:$0xf] (!%p383_p0)  ;;  %vm534_vm2 = vcmask (!%p383_p0), 1043456  }
  0x2a   : > { %907 = vmatprep.subr.mxu1 (!%p383_p0), %v1117_v6  ;;  %909 = vmatprep.mubr.msk.f32.mxu1 (!%p383_p0), %vm1116_vm0, %v1117_v6  ;;  %v528_v21 = vld [vmem:[%s1360_s3] sm:$0xff] (!%p383_p0)  ;;  %vm530_vm3 = vcmask (!%p383_p0), 31744   ;;  %vm633_vm4 = vcmask (!%p383_p0), 293888   ;;  %p443_p2 = scmp.lt.s32.totalorder (!%p383_p0), %s1097_s14, 1  ;;  %s716_s27 = sld [smem:[#allocation2]] (!%p383_p0)  ;;  %v722_v44 = vshrl.u32 (!%p383_p0), %v721_v43, 7 }
  0x2b   : > { %1015 = vset.pattern.permute.xlu0 (!%p383_p0), %v1118_v14  ;;  %1016 = vset.pattern.permute.xlu1 (!%p383_p0), %v1118_v14  ;;  %v632_v37 = vld [vmem:[%s1361_s4] sm:$0xff] (!%p383_p0)  ;;  %s878_s7 = sshll.u32 (!%p383_p0), %s1101_s15, 1 }
  0x2c   : > { %v727_v42 = vld [vmem:[%s1365_s8] sm:$0xff] (!%p383_p0)  ;;  %v723_v48 = vsub.s32 (!%p383_p0), 0, %v722_v44  ;;  %s751_s19 = sadd.s32 (!%p383_p0), %s1097_s14, %s878_s7 }
  0x30   : > { %s1261_s20 = scalar_select %p436_p1, %s1101_s15, 1  ;;  %v718_v46 = vstv %s716_s27 }
  0x31   : > { %s444_s22 = scalar_select %p443_p2, %s1097_s14, 1 }
  0x32   : > { %s882_s21 = sshll.u32 %s1261_s20, 5  ;;  %s871_s26 = sshll.u32 %s1261_s20, 1 }
  0x33   : > { %s440_s30 = scalar_lea.vmem %s1357_s0, %s882_s21  ;;  %s1281_s21 = sand.u32 1, %s1089_s12  }
  0x34   : > { %v449_v7 = vld [vmem:[%s440_s30] sm:$0xff]  ;;  %v450_v8 = vld [vmem:[%s440_s30 + $0x8] sm:$0xff]  ;;  %v451_v9 = vld [vmem:[%s440_s30 + $0x10] sm:$0xff]  ;;  %s939_s23 = smul.u32 40, %s1281_s21  ;;  %s868_s20 = sshll.u32 %s1281_s21, 3 }
  0x35   : > { %v926_v10 = vpack.c.bf16 %v450_v8, %v449_v7  ;;  %v452_v11 = vld [vmem:[%s440_s30 + $0x18] sm:$0xff]  ;;  %s740_s14 = scalar_lea.sflag [#allocation5], %s1281_s21 }
  0x36   : > { %v929_v12 = vpack.c.bf16 %v452_v11, %v451_v9  ;;  %s391_s28 = scalar_lea.vmem [#allocation3], %s939_s23  ;;  %s446_s23 = sadd.s32 %s871_s26, %s444_s22 }
  0x37   : > { %927 = vmatpush3.bf16.msra.mxu0 %v926_v10  ;;  %v613_v23 = vld [vmem:[%s391_s28] sm:$0xff]  ;;  %v614_v24 = vld [vmem:[%s391_s28 + $0x8] sm:$0xff]  ;;  %v615_v26 = vld [vmem:[%s391_s28 + $0x10] sm:$0xff]  ;;  %s447_s10 = scalar_lea.vmem %s1363_s6, %s446_s23  ;;  %s879_s22 = sshll.u32 %s751_s19, 7 }
  0x38   : > { %928 = vmatprep.subr.bf16.mxu0 %v1115_v5  ;;  %v616_v27 = vld [vmem:[%s391_s28 + $0x18] sm:$0xff]  ;;  %v617_v35 = vld [vmem:[%s391_s28 + $0x20] sm:$0xf]  ;;  %s435_s26 = scalar_lea.vmem [#allocation4], %s868_s20  ;;  %s1303_s30 = scalar_lea.hbm %s1366_s9, %s879_s22 }
  0x39   : > { %v717_v45 = vld [vmem:[%s447_s10] sm:$0x1]  ;;  %s755_s27 = sshll.u32 %s435_s26, 4  ;;  %s1119_s10 = smov [#allocation4]   ;;  %s1305_s27 = int_to_ptr.vmem [resolvable:$true] %s755_s27 }
  0x3a   : > { %v719_v47 = vmul.f32 %v718_v46, %v717_v45  ;;  %s1019_s15 = scalar_lea.vmem %s1305_s27, 128  ;;  %s1023_s20 = sshll.u32 %s1119_s10, 4  ;;  %s1024_s20 = int_to_ptr.vmem [resolvable:$false] %s1023_s20 }
  0x3b   : > { %930 = vmatpush3.bf16.msra.mxu0 %v929_v12  ;;  %p1020_p3 = scmp.ne.s32.totalorder %s1305_s27, %s1019_s15  ;;  %s1025_s7 = scalar_lea.vmem %s1024_s20, 256 }
  0x3c   : > { %v724_v49 = vrot.slane %v719_v47, %v723_v48  ;;  %p1026_p6 = scmp.lt.s32.totalorder %s1305_s27, %s1024_s20  ;;  %p1027_p7 = scmp.lt.s32.totalorder %s1025_s7, %s1019_s15 }
  0x3d   : > { %p1021_p4 = pnand %p1020_p3, %p1233_p8 }
  0x3e   : > { %905 = vmatmul.mubr.msk.f32.vlgmr.msra.gmra.mrb[0].mxu0 %vm454_vm1, %v448_v13  ;;  %p1028_p10 = por %p1027_p7, %p1026_p6 }
  0x3f   : > { %p1022_p5 = pneg %p1021_p4 }
  0x41   : > { %p1029_p11 = pnand %p1028_p10, %p1022_p5 }
 0x111   : > { %v524_v16 = vpop.f32.mrb[0].mxu0 }
 0x112   : > { %v525_v17 = vadd.f32 %v524_v16, %v453_v15  ;;  %v906_v18 = vpop.f32.mrb[1].mxu0 }
 0x114   : > { %v529_v19 = vmul.f32 %v525_v17, %v525_v17  ;;  %v610_v20 = vrot.slane %v525_v17, 4 }
 0x116   : > { %908 = vmatpush3.msk.msra.mxu1 %vm534_vm2, %v529_v19  ;;  %v612_v22 = vsel %vm534_vm2, %v525_v17, %v610_v20 }
 0x117   : > { %620 = vperm.xlu0 %1015, %v612_v22   ;;  %910 = vmatmul.mubr.msk.f32.vlgmr.msra.gmra.mrb[0].mxu1 %vm530_vm3, %v528_v21 }
 0x118   : > { %931 = vmatprep.subr.bf16.mxu1 %v1115_v5  ;;  %922 = vmatprep.mubr.msk.f32.mxu1 %vm1116_vm0, %v1117_v6 }
 0x11b   : > { %624 = vperm.xlu0 %1015, %v525_v17  }
 0x196   : > { %v621_v25 = vpop.permute.xlu0 %620 }
 0x197   : > { %v627_v28 = vmul.f32 %v621_v25, %v613_v23  ;;  %v628_v29 = vmul.f32 %v621_v25, %v614_v24  ;;  %v629_v30 = vmul.f32 %v621_v25, %v615_v26  ;;  %v630_v31 = vmul.f32 %v621_v25, %v616_v27 }
 0x199   : > { %v932_v32 = vpack.c.bf16 %v628_v29, %v627_v28  ;;  %v935_v33 = vpack.c.bf16 %v630_v31, %v629_v30 }
 0x19a   : > { %v625_v34 = vpop.permute.xlu0 %624 }
 0x19b   : > { %933 = vmatpush3.bf16.msra.mxu1 %v932_v32  ;;  %v631_v36 = vmul.f32 %v625_v34, %v617_v35 }
 0x19c   : > { %934 = vmatprep.subr.bf16.mxu1 %v1115_v5 }
 0x19f   : > { %936 = vmatpush3.bf16.msra.mxu1 %v935_v33 }
 0x1a0   : > { %920 = vmatprep.subr.mxu1 %v1117_v6 }
 0x1a3   : > { %921 = vmatpush3.msk.msra.mxu1 %vm534_vm2, %v631_v36 }
 0x1a4   : > { %923 = vmatmul.mubr.msk.f32.vlgmr.msra.gmra.mrb[2].mxu1 %vm633_vm4, %v632_v37 }
 0x1ea   : > { %v604_v38 = vpop.f32.mrb[0].mxu1 }
 0x1eb   : > { %v605_v39 = vadd.f32 1e-08, %v604_v38  ;;  %v911_v40 = vpop.f32.mrb[1].mxu1 }
 0x1ed   : > { %1017 = vrsqrt.f32 %v605_v39 }
 0x1f7   : > { %v1018_v41 = vpop.eup %1017 }
 0x1f8   : > { %712 = vperm.xlu1 %1016, %v1018_v41  }
 0x1fc   : > { %730 = vperm.xlu1 %1016, %v727_v42  }
 0x277   : > { %v713_v50 = vpop.permute.xlu1 %712  ;;  %v706_v51 = vpop.f32.mrb[2].mxu1 }
 0x278   : > { %v715_v52 = vmul.f32 %v713_v50, %v706_v51  ;;  %v924_v53 = vpop.f32.mrb[3].mxu1 }
 0x27a   : > { %v726_v54 = vadd.f32 %v724_v49, %v715_v52 }
 0x27b   : > { %v731_v55 = vpop.permute.xlu1 %730 }
 0x27c   : > { %v733_v56 = vadd.f32 %v731_v55, %v726_v54 }
 0x27e   : > { %vm734_vm5 = vcmp.ge.f32.partialorder %v733_v56, 0.0  ;;  %v735_v57 = vmul.f32 0.2, %v733_v56 }
 0x280   : > { %v736_v58 = vsel %vm734_vm5, %v733_v56, %v735_v57 }
 0x281   : > { %v737_v59 = vmul.f32 1.4142135, %v736_v58 }
 0x283   : > { %738 = vst [vmem:[%s435_s26] sm:$0xff] %v737_v59 }
 0x284   : > { %1032 = shalt.err (!%p1029_p11)
}
 0x285   : > { %s1033_s21 = scalar_lea.hbm %s1303_s30, 128  ;;  %s1037_s26 = scalar_lea.hbm %s1366_s9, 512 }
 0x286   : > { %p1034_p12 = scmp.ne.s32.totalorder %s1303_s30, %s1033_s21  ;;  %p1038_p1 = scmp.lt.u32.totalorder %s1303_s30, %s1366_s9 }
 0x287   : > { %p1039_p2 = scmp.lt.u32.totalorder %s1037_s26, %s1033_s21  ;;  %p1041_p4 = scmp.lt.u32.totalorder %s1033_s21, %s1303_s30 }
 0x288   : > { %p1035_p13 = pnand %p1034_p12, %p1233_p8 }
 0x289   : > { %p1040_p3 = por %p1039_p2, %p1038_p1 }
 0x28a   : > { %p1036_p0 = pneg %p1035_p13 }
 0x28b   : > { %p1042_p5 = por %p1041_p4, %p1040_p3 }
 0x28d   : > { %p1043_p6 = pnand %p1042_p5, %p1036_p0 }
 0x28f   : > { %1046 = shalt.err (!%p1043_p6)
}
 0x290   : > { %940 = dma.vmem_to_hbm [thread:$0]  (%p1233_p8), %s1305_s27, 128, %s1303_s30, %s740_s14  }
 0x291 PF: > { %p946_p7 = scmp.ge.s32.totalorder %s1113_s18, 2  ;;  %s767_s15 = sand.u32 1, %s1085_s11  }
 0x292   : > { %s768_s10 = scalar_lea.sflag [#allocation5], %s767_s15 }
 0x293   : > { %p943_p10 = pnand %p946_p7, %p1237_p9 }
 0x295   : > { %1080 = dma.done.wait (!%p943_p10), %s768_s10, 128  }
 0x296   : > { %1082 = vsyncadd (!%p943_p10), %s768_s10, 4294967168  ;;  %s23_s18 = sadd.s32 1, %s1113_s18   ;;  %s1374_s24 = sld [smem:[#allocation7_spill]] }
 0x297   : > { %p20_p11 = scmp.ge.s32.totalorder %s23_s18, 6   ;;  %s1375_s27 = sld [smem:[#allocation8_spill]] }
 0x298   : > { %s1376_s11 = smov %s1089_s12  ;;  %s1377_s12 = smov %s1093_s13 }
 0x299   : > { %s1378_s13 = smov %s1245_s29  ;;  %s1379_s14 = smov %s1105_s16 }
 0x29a   : > { %s1380_s15 = smov %s1109_s17  ;;  %22 = sbr.rel (!%p20_p11) target bundleno = 7 (0x7), region = 140 }
 0x29c   : > { %s1381_s16 = smov %s1374_s24 }
 0x29d   : > { %s1382_s17 = smov %s1375_s27 }
 0x2a1   :  { %773 = vsyncpa [#allocation5], 1 }
 0x2a2   :  { %775 = vsyncpa [#allocation5 + $0x1], 1 }

</bundles_post_ra>
